<compile_context>
chip_gen: v7x
topology: tpu7x:2x2x1
jax: 0.10.0
libtpu: 0.0.40
codegen_flags: <defaults>
</compile_context>

<pallas_src>
import functools

import jax
import jax.numpy as jnp
from jax import lax
from jax.experimental import pallas as pl
from jax.experimental.pallas import tpu as pltpu


_UNROLL_LIMIT = 32             # fully unroll the root recurrence only for small M
_VMEM_TILE_BUDGET = 24 << 20   # bytes for double-buffered in+out tiles (v7x-safe)


def _round_up(n, k):
    return ((n + k - 1) // k) * k


def _pol_root_real_kernel(x_ref, a_ref):
    """Real roots -> polynomial coefficients.

    x_ref : (M, TB)    roots, batch on the lane axis
    a_ref : (MP8, TB)  coefficients; rows M+1..MP8-1 stay exactly zero
    """
    m, tb = x_ref.shape
    mp8 = a_ref.shape[0]

    # a = [1, 0, ..., 0] along the coefficient (sublane) axis.
    row = lax.broadcasted_iota(jnp.int32, (mp8, tb), 0)
    a = (row == 0).astype(jnp.float32)

    def step(k, a):
        rr = x_ref[pl.ds(k, 1), :]        # (1, TB): sublane-broadcast multiplier
        # Shift coefficient index by +1 via an XLU sublane rotate.  The value
        # wrapped into row 0 is old a[MP8-1]; row j only becomes nonzero after
        # step j-1 and MP8-1 >= M, so the wrapped value is provably zero for
        # every executed step -> no mask needed.
        a_s = pltpu.roll(a, 1, axis=0)
        return a - rr * a_s

    if m <= _UNROLL_LIMIT:
        for k in range(m):
            a = step(k, a)
    else:
        # TODO(synk): for very large M a VMEM-scratch accumulator updated via
        # sublane-offset ref slices would keep vreg pressure lower still.
        a = lax.fori_loop(0, m, step, a, unroll=4)

    a_ref[...] = a


def _pol_root_complex_kernel(x_ref, a_ref):
    """Complex roots -> polynomial coefficients (split real/imag planes).

    x_ref : (2, M, TB)    [real; imag] roots, batch on the lane axis
    a_ref : (2, MP8, TB)  [real; imag] coefficients
    """
    _, m, tb = x_ref.shape
    mp8 = a_ref.shape[1]

    row = lax.broadcasted_iota(jnp.int32, (mp8, tb), 0)
    ar = (row == 0).astype(jnp.float32)
    ai = jnp.zeros((mp8, tb), jnp.float32)

    def step(k, carry):
        ar, ai = carry
        rr = x_ref[0, pl.ds(k, 1), :]     # (1, TB)
        ri = x_ref[1, pl.ds(k, 1), :]     # (1, TB)
        ar_s = pltpu.roll(ar, 1, axis=0)  # wrap value is 0 (see real kernel)
        ai_s = pltpu.roll(ai, 1, axis=0)
        return (ar - (rr * ar_s - ri * ai_s),
                ai - (rr * ai_s + ri * ar_s))

    if m <= _UNROLL_LIMIT:
        carry = (ar, ai)
        for k in range(m):
            carry = step(k, carry)
        ar, ai = carry
    else:
        ar, ai = lax.fori_loop(0, m, step, (ar, ai), unroll=4)

    a_ref[0, :, :] = ar
    a_ref[1, :, :] = ai


@functools.partial(jax.jit, static_argnames=("order", "lane_tile"))
def roots_to_polynomial(x, order, lane_tile=1024):
    """Pallas equivalent of diffsptk.RootsToPolynomial(order)(x).

    Compute runs in float32 (split real/imag for complex inputs).
    # TODO(synk): float64/complex128 inputs are computed in f32 precision.
    """
    assert order >= 1
    assert x.shape[-1] == order, "number of roots must equal `order`"

    lead = x.shape[:-1]
    m = order
    mp8 = _round_up(m + 1, 8)                    # coefficient rows, sublane-padded
    is_complex = jnp.iscomplexobj(x)
    planes = 2 if is_complex else 1

    # Flatten leading dims, transpose so the batch lives on the lane axis.
    xr = jnp.real(x).astype(jnp.float32).reshape(-1, m).T        # (M, B)
    b = xr.shape[1]

    # Lane tile: multiple of 128, as big as useful, capped by a VMEM budget
    # (in + out tiles, double-buffered) so big-M configs stay v7x-safe.
    bytes_per_lane = 4 * planes * (m + mp8) * 2
    budget_tb = max(128, (_VMEM_TILE_BUDGET // bytes_per_lane) // 128 * 128)
    tb = min(lane_tile, _round_up(b, 128), budget_tb)
    tb = max(128, _round_up(tb, 128))
    bp = _round_up(b, tb)

    def pad_lanes(v):
        return jnp.pad(v, ((0, 0), (0, bp - b))) if bp != b else v

    xr = pad_lanes(xr)
    grid = (bp // tb,)
    cparams = pltpu.CompilerParams(dimension_semantics=("parallel",))

    if is_complex:
        xi = pad_lanes(jnp.imag(x).astype(jnp.float32).reshape(-1, m).T)
        x_in = jnp.stack([xr, xi], axis=0)                       # (2, M, Bp)
        out = pl.pallas_call(
            _pol_root_complex_kernel,
            out_shape=jax.ShapeDtypeStruct((2, mp8, bp), jnp.float32),
            grid_spec=pltpu.PrefetchScalarGridSpec(
                num_scalar_prefetch=0,
                grid=grid,
                in_specs=[pl.BlockSpec((2, m, tb), lambda i: (0, 0, i))],
                out_specs=pl.BlockSpec((2, mp8, tb), lambda i: (0, 0, i)),
            ),
            compiler_params=cparams,
        )(x_in)
        ar = out[0, : m + 1, :b].T.reshape(*lead, m + 1)
        ai = out[1, : m + 1, :b].T.reshape(*lead, m + 1)
        return lax.complex(ar, ai).astype(x.dtype)

    out = pl.pallas_call(
        _pol_root_real_kernel,
        out_shape=jax.ShapeDtypeStruct((mp8, bp), jnp.float32),
        grid_spec=pltpu.PrefetchScalarGridSpec(
            num_scalar_prefetch=0,
            grid=grid,
            in_specs=[pl.BlockSpec((m, tb), lambda i: (0, i))],
            out_specs=pl.BlockSpec((mp8, tb), lambda i: (0, i)),
        ),
        compiler_params=cparams,
    )(xr)
    a = out[: m + 1, :b].T.reshape(*lead, m + 1)
    return a.astype(x.dtype)


def _reference(xr, xi):
    """Pure-JAX (split real/imag) mirror of the PyTorch loop, for checking."""
    b, m = xr.shape
    ar = jnp.concatenate([jnp.ones((b, 1)), jnp.zeros((b, m))], axis=1)
    ai = jnp.zeros((b, m + 1))
    for k in range(m):
        rr, ri = xr[:, k:k + 1], xi[:, k:k + 1]
        nar = ar[:, 1:] - (rr * ar[:, :-1] - ri * ai[:, :-1])
        nai = ai[:, 1:] - (rr * ai[:, :-1] + ri * ar[:, :-1])
        ar = jnp.concatenate([ar[:, :1], nar], axis=1)
        ai = jnp.concatenate([ai[:, :1], nai], axis=1)
    return ar, ai


if __name__ == "__main__":
    order = 8                      # M roots -> M+1 coefficients
    batch_shape = (2, 8)           # arbitrary leading dims, flattened to B=16

    key = jax.random.PRNGKey(0)
    kr, ki = jax.random.split(key)
    x_re = jax.random.normal(kr, batch_shape + (order,), jnp.float32)
    x_im = jax.random.normal(ki, batch_shape + (order,), jnp.float32)
    x = (x_re + 1j * x_im).astype(jnp.complex64)

    # complex path
    a = jax.block_until_ready(roots_to_polynomial(x, order))
    assert a.shape == batch_shape + (order + 1,)
    assert a.dtype == x.dtype
    ar_ref, ai_ref = _reference(x_re.reshape(-1, order), x_im.reshape(-1, order))
    a_ref = (ar_ref + 1j * ai_ref).reshape(*batch_shape, order + 1)
    assert jnp.allclose(a, a_ref, rtol=1e-4, atol=1e-4)

    # real-only fast path: docstring example [3, 4, -1] -> [1, -6, 5, 12]
    x_doc = jnp.array([[3.0, 4.0, -1.0]], jnp.float32)
    a_doc = jax.block_until_ready(roots_to_polynomial(x_doc, 3))
    assert jnp.allclose(a_doc[0], jnp.array([1.0, -6.0, 5.0, 12.0]))

    # real random batch through the real-only kernel
    x_real = jax.random.normal(jax.random.PRNGKey(0), (4, 5), jnp.float32)
    a_real = jax.block_until_ready(roots_to_polynomial(x_real, 5))
    ar_r, _ = _reference(x_real, jnp.zeros_like(x_real))
    assert jnp.allclose(a_real, ar_r, rtol=1e-4, atol=1e-4)

    print("KERNEL_OK")
</pallas_src>

<mosaic_0001>
module attributes {stable_mosaic.version = 11 : i64} {
  func.func @_pol_root_complex_kernel(%arg0: i32, %arg1: memref<2x8x128xf32, #tpu.memory_space<vmem>>, %arg2: memref<2x16x128xf32, #tpu.memory_space<vmem>>) attributes {dimension_semantics = [#tpu.dimension_semantics<parallel>], iteration_bounds = array<i64: 1>, scalar_prefetch = 0 : i64, scratch_operands = 0 : i64, tpu.core_type = #tpu.core_type<tc>, window_params = [{transform_indices = @transform_0, window_bounds = array<i64: 2, 8, 128>}, {transform_indices = @transform_1, window_bounds = array<i64: 2, 16, 128>}]} {
    %0 = tpu.iota {dimensions = array<i32: 0>} : vector<16x128xi32>
    %c0_i32 = arith.constant 0 : i32
    %1 = vector.broadcast %c0_i32 : i32 to vector<16x128xi32>
    %2 = arith.cmpi eq, %0, %1 : vector<16x128xi32>
    %3 = arith.extui %2 : vector<16x128xi1> to vector<16x128xi32>
    %4 = arith.sitofp %3 : vector<16x128xi32> to vector<16x128xf32>
    %cst = arith.constant 0.000000e+00 : f32
    %5 = vector.broadcast %cst : f32 to vector<16x128xf32>
    %c0 = arith.constant 0 : index
    %c0_0 = arith.constant 0 : index
    %c0_1 = arith.constant 0 : index
    %6 = vector.load %arg1[%c0, %c0_0, %c0_1] : memref<2x8x128xf32, #tpu.memory_space<vmem>>, vector<1x1x128xf32>
    %7 = vector.shape_cast %6 : vector<1x1x128xf32> to vector<1x128xf32>
    %c1 = arith.constant 1 : index
    %c0_2 = arith.constant 0 : index
    %c0_3 = arith.constant 0 : index
    %8 = vector.load %arg1[%c1, %c0_2, %c0_3] : memref<2x8x128xf32, #tpu.memory_space<vmem>>, vector<1x1x128xf32>
    %9 = vector.shape_cast %8 : vector<1x1x128xf32> to vector<1x128xf32>
    %c1_i32 = arith.constant 1 : i32
    %10 = tpu.dynamic_rotate %4 by %c1_i32 dim 0 : vector<16x128xf32>, i32 -> vector<16x128xf32>
    %c1_i32_4 = arith.constant 1 : i32
    %11 = tpu.dynamic_rotate %5 by %c1_i32_4 dim 0 : vector<16x128xf32>, i32 -> vector<16x128xf32>
    %12 = vector.broadcast %7 : vector<1x128xf32> to vector<16x128xf32>
    %13 = arith.mulf %12, %10 : vector<16x128xf32>
    %14 = vector.broadcast %9 : vector<1x128xf32> to vector<16x128xf32>
    %15 = arith.mulf %14, %11 : vector<16x128xf32>
    %16 = arith.subf %13, %15 : vector<16x128xf32>
    %17 = arith.subf %4, %16 : vector<16x128xf32>
    %18 = vector.broadcast %7 : vector<1x128xf32> to vector<16x128xf32>
    %19 = arith.mulf %18, %11 : vector<16x128xf32>
    %20 = vector.broadcast %9 : vector<1x128xf32> to vector<16x128xf32>
    %21 = arith.mulf %20, %10 : vector<16x128xf32>
    %22 = arith.addf %19, %21 : vector<16x128xf32>
    %23 = arith.subf %5, %22 : vector<16x128xf32>
    %c0_5 = arith.constant 0 : index
    %c1_6 = arith.constant 1 : index
    %c0_7 = arith.constant 0 : index
    %24 = vector.load %arg1[%c0_5, %c1_6, %c0_7] : memref<2x8x128xf32, #tpu.memory_space<vmem>>, vector<1x1x128xf32>
    %25 = vector.shape_cast %24 : vector<1x1x128xf32> to vector<1x128xf32>
    %c1_8 = arith.constant 1 : index
    %c1_9 = arith.constant 1 : index
    %c0_10 = arith.constant 0 : index
    %26 = vector.load %arg1[%c1_8, %c1_9, %c0_10] : memref<2x8x128xf32, #tpu.memory_space<vmem>>, vector<1x1x128xf32>
    %27 = vector.shape_cast %26 : vector<1x1x128xf32> to vector<1x128xf32>
    %c1_i32_11 = arith.constant 1 : i32
    %28 = tpu.dynamic_rotate %17 by %c1_i32_11 dim 0 : vector<16x128xf32>, i32 -> vector<16x128xf32>
    %c1_i32_12 = arith.constant 1 : i32
    %29 = tpu.dynamic_rotate %23 by %c1_i32_12 dim 0 : vector<16x128xf32>, i32 -> vector<16x128xf32>
    %30 = vector.broadcast %25 : vector<1x128xf32> to vector<16x128xf32>
    %31 = arith.mulf %30, %28 : vector<16x128xf32>
    %32 = vector.broadcast %27 : vector<1x128xf32> to vector<16x128xf32>
    %33 = arith.mulf %32, %29 : vector<16x128xf32>
    %34 = arith.subf %31, %33 : vector<16x128xf32>
    %35 = arith.subf %17, %34 : vector<16x128xf32>
    %36 = vector.broadcast %25 : vector<1x128xf32> to vector<16x128xf32>
    %37 = arith.mulf %36, %29 : vector<16x128xf32>
    %38 = vector.broadcast %27 : vector<1x128xf32> to vector<16x128xf32>
    %39 = arith.mulf %38, %28 : vector<16x128xf32>
    %40 = arith.addf %37, %39 : vector<16x128xf32>
    %41 = arith.subf %23, %40 : vector<16x128xf32>
    %c0_13 = arith.constant 0 : index
    %c2 = arith.constant 2 : index
    %c0_14 = arith.constant 0 : index
    %42 = vector.load %arg1[%c0_13, %c2, %c0_14] : memref<2x8x128xf32, #tpu.memory_space<vmem>>, vector<1x1x128xf32>
    %43 = vector.shape_cast %42 : vector<1x1x128xf32> to vector<1x128xf32>
    %c1_15 = arith.constant 1 : index
    %c2_16 = arith.constant 2 : index
    %c0_17 = arith.constant 0 : index
    %44 = vector.load %arg1[%c1_15, %c2_16, %c0_17] : memref<2x8x128xf32, #tpu.memory_space<vmem>>, vector<1x1x128xf32>
    %45 = vector.shape_cast %44 : vector<1x1x128xf32> to vector<1x128xf32>
    %c1_i32_18 = arith.constant 1 : i32
    %46 = tpu.dynamic_rotate %35 by %c1_i32_18 dim 0 : vector<16x128xf32>, i32 -> vector<16x128xf32>
    %c1_i32_19 = arith.constant 1 : i32
    %47 = tpu.dynamic_rotate %41 by %c1_i32_19 dim 0 : vector<16x128xf32>, i32 -> vector<16x128xf32>
    %48 = vector.broadcast %43 : vector<1x128xf32> to vector<16x128xf32>
    %49 = arith.mulf %48, %46 : vector<16x128xf32>
    %50 = vector.broadcast %45 : vector<1x128xf32> to vector<16x128xf32>
    %51 = arith.mulf %50, %47 : vector<16x128xf32>
    %52 = arith.subf %49, %51 : vector<16x128xf32>
    %53 = arith.subf %35, %52 : vector<16x128xf32>
    %54 = vector.broadcast %43 : vector<1x128xf32> to vector<16x128xf32>
    %55 = arith.mulf %54, %47 : vector<16x128xf32>
    %56 = vector.broadcast %45 : vector<1x128xf32> to vector<16x128xf32>
    %57 = arith.mulf %56, %46 : vector<16x128xf32>
    %58 = arith.addf %55, %57 : vector<16x128xf32>
    %59 = arith.subf %41, %58 : vector<16x128xf32>
    %c0_20 = arith.constant 0 : index
    %c3 = arith.constant 3 : index
    %c0_21 = arith.constant 0 : index
    %60 = vector.load %arg1[%c0_20, %c3, %c0_21] : memref<2x8x128xf32, #tpu.memory_space<vmem>>, vector<1x1x128xf32>
    %61 = vector.shape_cast %60 : vector<1x1x128xf32> to vector<1x128xf32>
    %c1_22 = arith.constant 1 : index
    %c3_23 = arith.constant 3 : index
    %c0_24 = arith.constant 0 : index
    %62 = vector.load %arg1[%c1_22, %c3_23, %c0_24] : memref<2x8x128xf32, #tpu.memory_space<vmem>>, vector<1x1x128xf32>
    %63 = vector.shape_cast %62 : vector<1x1x128xf32> to vector<1x128xf32>
    %c1_i32_25 = arith.constant 1 : i32
    %64 = tpu.dynamic_rotate %53 by %c1_i32_25 dim 0 : vector<16x128xf32>, i32 -> vector<16x128xf32>
    %c1_i32_26 = arith.constant 1 : i32
    %65 = tpu.dynamic_rotate %59 by %c1_i32_26 dim 0 : vector<16x128xf32>, i32 -> vector<16x128xf32>
    %66 = vector.broadcast %61 : vector<1x128xf32> to vector<16x128xf32>
    %67 = arith.mulf %66, %64 : vector<16x128xf32>
    %68 = vector.broadcast %63 : vector<1x128xf32> to vector<16x128xf32>
    %69 = arith.mulf %68, %65 : vector<16x128xf32>
    %70 = arith.subf %67, %69 : vector<16x128xf32>
    %71 = arith.subf %53, %70 : vector<16x128xf32>
    %72 = vector.broadcast %61 : vector<1x128xf32> to vector<16x128xf32>
    %73 = arith.mulf %72, %65 : vector<16x128xf32>
    %74 = vector.broadcast %63 : vector<1x128xf32> to vector<16x128xf32>
    %75 = arith.mulf %74, %64 : vector<16x128xf32>
    %76 = arith.addf %73, %75 : vector<16x128xf32>
    %77 = arith.subf %59, %76 : vector<16x128xf32>
    %c0_27 = arith.constant 0 : index
    %c4 = arith.constant 4 : index
    %c0_28 = arith.constant 0 : index
    %78 = vector.load %arg1[%c0_27, %c4, %c0_28] : memref<2x8x128xf32, #tpu.memory_space<vmem>>, vector<1x1x128xf32>
    %79 = vector.shape_cast %78 : vector<1x1x128xf32> to vector<1x128xf32>
    %c1_29 = arith.constant 1 : index
    %c4_30 = arith.constant 4 : index
    %c0_31 = arith.constant 0 : index
    %80 = vector.load %arg1[%c1_29, %c4_30, %c0_31] : memref<2x8x128xf32, #tpu.memory_space<vmem>>, vector<1x1x128xf32>
    %81 = vector.shape_cast %80 : vector<1x1x128xf32> to vector<1x128xf32>
    %c1_i32_32 = arith.constant 1 : i32
    %82 = tpu.dynamic_rotate %71 by %c1_i32_32 dim 0 : vector<16x128xf32>, i32 -> vector<16x128xf32>
    %c1_i32_33 = arith.constant 1 : i32
    %83 = tpu.dynamic_rotate %77 by %c1_i32_33 dim 0 : vector<16x128xf32>, i32 -> vector<16x128xf32>
    %84 = vector.broadcast %79 : vector<1x128xf32> to vector<16x128xf32>
    %85 = arith.mulf %84, %82 : vector<16x128xf32>
    %86 = vector.broadcast %81 : vector<1x128xf32> to vector<16x128xf32>
    %87 = arith.mulf %86, %83 : vector<16x128xf32>
    %88 = arith.subf %85, %87 : vector<16x128xf32>
    %89 = arith.subf %71, %88 : vector<16x128xf32>
    %90 = vector.broadcast %79 : vector<1x128xf32> to vector<16x128xf32>
    %91 = arith.mulf %90, %83 : vector<16x128xf32>
    %92 = vector.broadcast %81 : vector<1x128xf32> to vector<16x128xf32>
    %93 = arith.mulf %92, %82 : vector<16x128xf32>
    %94 = arith.addf %91, %93 : vector<16x128xf32>
    %95 = arith.subf %77, %94 : vector<16x128xf32>
    %c0_34 = arith.constant 0 : index
    %c5 = arith.constant 5 : index
    %c0_35 = arith.constant 0 : index
    %96 = vector.load %arg1[%c0_34, %c5, %c0_35] : memref<2x8x128xf32, #tpu.memory_space<vmem>>, vector<1x1x128xf32>
    %97 = vector.shape_cast %96 : vector<1x1x128xf32> to vector<1x128xf32>
    %c1_36 = arith.constant 1 : index
    %c5_37 = arith.constant 5 : index
    %c0_38 = arith.constant 0 : index
    %98 = vector.load %arg1[%c1_36, %c5_37, %c0_38] : memref<2x8x128xf32, #tpu.memory_space<vmem>>, vector<1x1x128xf32>
    %99 = vector.shape_cast %98 : vector<1x1x128xf32> to vector<1x128xf32>
    %c1_i32_39 = arith.constant 1 : i32
    %100 = tpu.dynamic_rotate %89 by %c1_i32_39 dim 0 : vector<16x128xf32>, i32 -> vector<16x128xf32>
    %c1_i32_40 = arith.constant 1 : i32
    %101 = tpu.dynamic_rotate %95 by %c1_i32_40 dim 0 : vector<16x128xf32>, i32 -> vector<16x128xf32>
    %102 = vector.broadcast %97 : vector<1x128xf32> to vector<16x128xf32>
    %103 = arith.mulf %102, %100 : vector<16x128xf32>
    %104 = vector.broadcast %99 : vector<1x128xf32> to vector<16x128xf32>
    %105 = arith.mulf %104, %101 : vector<16x128xf32>
    %106 = arith.subf %103, %105 : vector<16x128xf32>
    %107 = arith.subf %89, %106 : vector<16x128xf32>
    %108 = vector.broadcast %97 : vector<1x128xf32> to vector<16x128xf32>
    %109 = arith.mulf %108, %101 : vector<16x128xf32>
    %110 = vector.broadcast %99 : vector<1x128xf32> to vector<16x128xf32>
    %111 = arith.mulf %110, %100 : vector<16x128xf32>
    %112 = arith.addf %109, %111 : vector<16x128xf32>
    %113 = arith.subf %95, %112 : vector<16x128xf32>
    %c0_41 = arith.constant 0 : index
    %c6 = arith.constant 6 : index
    %c0_42 = arith.constant 0 : index
    %114 = vector.load %arg1[%c0_41, %c6, %c0_42] : memref<2x8x128xf32, #tpu.memory_space<vmem>>, vector<1x1x128xf32>
    %115 = vector.shape_cast %114 : vector<1x1x128xf32> to vector<1x128xf32>
    %c1_43 = arith.constant 1 : index
    %c6_44 = arith.constant 6 : index
    %c0_45 = arith.constant 0 : index
    %116 = vector.load %arg1[%c1_43, %c6_44, %c0_45] : memref<2x8x128xf32, #tpu.memory_space<vmem>>, vector<1x1x128xf32>
    %117 = vector.shape_cast %116 : vector<1x1x128xf32> to vector<1x128xf32>
    %c1_i32_46 = arith.constant 1 : i32
    %118 = tpu.dynamic_rotate %107 by %c1_i32_46 dim 0 : vector<16x128xf32>, i32 -> vector<16x128xf32>
    %c1_i32_47 = arith.constant 1 : i32
    %119 = tpu.dynamic_rotate %113 by %c1_i32_47 dim 0 : vector<16x128xf32>, i32 -> vector<16x128xf32>
    %120 = vector.broadcast %115 : vector<1x128xf32> to vector<16x128xf32>
    %121 = arith.mulf %120, %118 : vector<16x128xf32>
    %122 = vector.broadcast %117 : vector<1x128xf32> to vector<16x128xf32>
    %123 = arith.mulf %122, %119 : vector<16x128xf32>
    %124 = arith.subf %121, %123 : vector<16x128xf32>
    %125 = arith.subf %107, %124 : vector<16x128xf32>
    %126 = vector.broadcast %115 : vector<1x128xf32> to vector<16x128xf32>
    %127 = arith.mulf %126, %119 : vector<16x128xf32>
    %128 = vector.broadcast %117 : vector<1x128xf32> to vector<16x128xf32>
    %129 = arith.mulf %128, %118 : vector<16x128xf32>
    %130 = arith.addf %127, %129 : vector<16x128xf32>
    %131 = arith.subf %113, %130 : vector<16x128xf32>
    %c0_48 = arith.constant 0 : index
    %c7 = arith.constant 7 : index
    %c0_49 = arith.constant 0 : index
    %132 = vector.load %arg1[%c0_48, %c7, %c0_49] : memref<2x8x128xf32, #tpu.memory_space<vmem>>, vector<1x1x128xf32>
    %133 = vector.shape_cast %132 : vector<1x1x128xf32> to vector<1x128xf32>
    %c1_50 = arith.constant 1 : index
    %c7_51 = arith.constant 7 : index
    %c0_52 = arith.constant 0 : index
    %134 = vector.load %arg1[%c1_50, %c7_51, %c0_52] : memref<2x8x128xf32, #tpu.memory_space<vmem>>, vector<1x1x128xf32>
    %135 = vector.shape_cast %134 : vector<1x1x128xf32> to vector<1x128xf32>
    %c1_i32_53 = arith.constant 1 : i32
    %136 = tpu.dynamic_rotate %125 by %c1_i32_53 dim 0 : vector<16x128xf32>, i32 -> vector<16x128xf32>
    %c1_i32_54 = arith.constant 1 : i32
    %137 = tpu.dynamic_rotate %131 by %c1_i32_54 dim 0 : vector<16x128xf32>, i32 -> vector<16x128xf32>
    %138 = vector.broadcast %133 : vector<1x128xf32> to vector<16x128xf32>
    %139 = arith.mulf %138, %136 : vector<16x128xf32>
    %140 = vector.broadcast %135 : vector<1x128xf32> to vector<16x128xf32>
    %141 = arith.mulf %140, %137 : vector<16x128xf32>
    %142 = arith.subf %139, %141 : vector<16x128xf32>
    %143 = arith.subf %125, %142 : vector<16x128xf32>
    %144 = vector.broadcast %133 : vector<1x128xf32> to vector<16x128xf32>
    %145 = arith.mulf %144, %137 : vector<16x128xf32>
    %146 = vector.broadcast %135 : vector<1x128xf32> to vector<16x128xf32>
    %147 = arith.mulf %146, %136 : vector<16x128xf32>
    %148 = arith.addf %145, %147 : vector<16x128xf32>
    %149 = arith.subf %131, %148 : vector<16x128xf32>
    %c0_55 = arith.constant 0 : index
    %c0_56 = arith.constant 0 : index
    %c0_57 = arith.constant 0 : index
    %150 = vector.load %arg2[%c0_55, %c0_56, %c0_57] : memref<2x16x128xf32, #tpu.memory_space<vmem>>, vector<1x16x128xf32>
    %151 = vector.shape_cast %150 : vector<1x16x128xf32> to vector<16x128xf32>
    %152 = vector.shape_cast %143 : vector<16x128xf32> to vector<1x16x128xf32>
    tpu.vector_store %arg2[%c0_55, %c0_56, %c0_57], %152 {strides = array<i32>} : memref<2x16x128xf32, #tpu.memory_space<vmem>>, vector<1x16x128xf32>,
    %c1_58 = arith.constant 1 : index
    %c0_59 = arith.constant 0 : index
    %c0_60 = arith.constant 0 : index
    %153 = vector.load %arg2[%c1_58, %c0_59, %c0_60] : memref<2x16x128xf32, #tpu.memory_space<vmem>>, vector<1x16x128xf32>
    %154 = vector.shape_cast %153 : vector<1x16x128xf32> to vector<16x128xf32>
    %155 = vector.shape_cast %149 : vector<16x128xf32> to vector<1x16x128xf32>
    tpu.vector_store %arg2[%c1_58, %c0_59, %c0_60], %155 {strides = array<i32>} : memref<2x16x128xf32, #tpu.memory_space<vmem>>, vector<1x16x128xf32>,
    return
  }
  func.func @transform_0(%arg0: i32) -> (i32, i32, i32) {
    %c0_i32 = arith.constant 0 : i32
    %c0_i32_0 = arith.constant 0 : i32
    %c0_i32_1 = arith.constant 0 : i32
    return %c0_i32, %c0_i32_0, %arg0 : i32, i32, i32
  }
  func.func @transform_1(%arg0: i32) -> (i32, i32, i32) {
    %c0_i32 = arith.constant 0 : i32
    %c0_i32_0 = arith.constant 0 : i32
    %c0_i32_1 = arith.constant 0 : i32
    return %c0_i32, %c0_i32_0, %arg0 : i32, i32, i32
  }
}

</mosaic_0001>

<bundles_post_ra>
// kernel: custom-call.1
= control target key start
LH: loop header
LB: loop body
LE: loop exit
PB: predicated region body
PF: predicated region fallthrough
CT: control target
= control target key end

     0   :  { %s59_s0 = inlined_call_operand.hbm [shape: c64[2,8,8], index: 0, kind: input, shape index: {}]   ;;  %s60_s1 = inlined_call_operand.vmem [shape: f32[2,8,8], index: 1, kind: output, shape index: {}]  }
   0x1   :  { %s2_s8 = scalar_lea.hbm %s59_s0, 256 }
   0x2   :  { %3 = vsyncpa [#allocation0], 0  ;;  %s4_s11 = sshll.u32 %s60_s1, 4  ;;  %s34_s14 = scalar_lea.hbm %s59_s0, 512  ;;  %s5_s11 = int_to_ptr.vmem [resolvable:$true] %s4_s11 }
   0x3   :  { %p11_p0 = scmp.ne.s32.totalorder %s2_s8, %s34_s14  ;;  %p13_p1 = scmp.lt.u32.totalorder %s2_s8, %s59_s0 }
   0x4   :  { %p14_p2 = scmp.lt.u32.totalorder %s34_s14, %s34_s14  ;;  %p16_p4 = scmp.lt.u32.totalorder %s34_s14, %s2_s8 }
   0x6   :  { %p15_p3 = por %p14_p2, %p13_p1 }
   0x8   :  { %p17_p5 = por %p16_p4, %p15_p3 }
   0xa   :  { %p18_p6 = pnand %p17_p5, %p11_p0 }
   0xc   :  { %21 = shalt.err (!%p18_p6)  }
   0xd   :  { %s22_s17 = scalar_lea.vmem %s5_s11, 256  ;;  %p27_p8 = scmp.lt.s32.totalorder %s5_s11, %s5_s11 }
   0xe   :  { %p23_p7 = scmp.ne.s32.totalorder %s5_s11, %s22_s17  ;;  %p28_p9 = scmp.lt.s32.totalorder %s22_s17, %s22_s17 }
  0x10   :  { %p29_p10 = por %p28_p9, %p27_p8 }
  0x12   :  { %p30_p11 = pnand %p29_p10, %p23_p7 }
  0x14   :  { %33 = shalt.err (!%p30_p11)  }
  0x15   :  { %7 = dma.hbm_to_vmem [thread:$0]  %s2_s8, 256, %s5_s11, [#allocation0] }
  0x16   :  { %35 = dma.done.wait [#allocation0], 256  }
  0x17   :  { %36 = vsyncadd [#allocation0], 4294967040 }
  0x18   :  { %9 = vsyncpa [#allocation0], 1 }

// kernel: custom-call
= control target key start
LH: loop header
LB: loop body
LE: loop exit
PB: predicated region body
PF: predicated region fallthrough
CT: control target
= control target key end

     0   :  { %2 = vsyncpa [#allocation0], 0  ;;  %s61_s0 = inlined_call_operand.hbm [shape: c64[2,8,8], index: 0, kind: input, shape index: {}]   ;;  %s62_s1 = inlined_call_operand.vmem [shape: f32[2,8,8], index: 1, kind: output, shape index: {}]  }
   0x1   :  { %s3_s8 = sshll.u32 %s62_s1, 4  ;;  %s9_s11 = scalar_lea.hbm %s61_s0, 256  ;;  %s4_s8 = int_to_ptr.vmem [resolvable:$true] %s3_s8 }
   0x2   :  { %p10_p0 = scmp.ne.s32.totalorder %s61_s0, %s9_s11  ;;  %s11_s16 = scalar_lea.hbm %s61_s0, 512 }
   0x3   :  { %p12_p1 = scmp.lt.u32.totalorder %s11_s16, %s9_s11  ;;  %p13_p2 = scmp.lt.u32.totalorder %s9_s11, %s61_s0 }
   0x5   :  { %p14_p3 = por %p13_p2, %p12_p1 }
   0x7   :  { %p15_p4 = pnand %p14_p3, %p10_p0 }
   0x9   :  { %18 = shalt.err (!%p15_p4)  }
   0xa   :  { %s19_s1 = scalar_lea.vmem %s4_s8, 256  ;;  %p24_p6 = scmp.lt.s32.totalorder %s4_s8, %s4_s8 }
   0xb   :  { %p20_p5 = scmp.ne.s32.totalorder %s4_s8, %s19_s1  ;;  %p25_p7 = scmp.lt.s32.totalorder %s19_s1, %s19_s1 }
   0xd   :  { %p26_p8 = por %p25_p7, %p24_p6 }
   0xf   :  { %p27_p9 = pnand %p26_p8, %p20_p5 }
  0x11   :  { %30 = shalt.err (!%p27_p9)  }
  0x12   :  { %6 = dma.hbm_to_vmem [thread:$0]  %s61_s0, 256, %s4_s8, [#allocation0] }
  0x13   :  { %31 = dma.done.wait [#allocation0], 256  }
  0x14   :  { %32 = vsyncadd [#allocation0], 4294967040 }
  0x15   :  { %8 = vsyncpa [#allocation0], 1 }

// kernel: custom-call.2
= control target key start
LH: loop header
LB: loop body
LE: loop exit
PB: predicated region body
PF: predicated region fallthrough
CT: control target
= control target key end

     0   :  { %s126_s0 = inlined_call_operand.vmem [shape: f32[2,8,9], index: 0, kind: input, shape index: {}]   ;;  %s127_s1 = inlined_call_operand.vmem [shape: f32[2,8,9], index: 1, kind: input, shape index: {}]   ;;  %s128_s2 = inlined_call_operand.hbm [shape: c64[2,8,9], index: 2, kind: output, shape index: {}]  }
   0x1   :  { %s87_s11 = scalar_lea.hbm %s128_s2, 256 }
   0x2   :  { %4 = vsyncpa [#allocation0], 0  ;;  %s5_s14 = sshll.u32 %s126_s0, 4  ;;  %s6_s14 = int_to_ptr.vmem [resolvable:$true] %s5_s14 }
   0x3   :  { %s18_s15 = scalar_lea.vmem %s6_s14, 256  ;;  %p23_p1 = scmp.lt.s32.totalorder %s6_s14, %s6_s14 }
   0x4   :  { %p19_p0 = scmp.ne.s32.totalorder %s6_s14, %s18_s15  ;;  %p24_p2 = scmp.lt.s32.totalorder %s18_s15, %s18_s15 }
   0x6   :  { %p25_p3 = por %p24_p2, %p23_p1 }
   0x8   :  { %p26_p4 = pnand %p25_p3, %p19_p0 }
   0xa   :  { %29 = shalt.err (!%p26_p4)  }
   0xb   :  { %p31_p5 = scmp.ne.s32.totalorder %s128_s2, %s87_s11  ;;  %s32_s0 = scalar_lea.hbm %s128_s2, 512 }
   0xc   :  { %p33_p6 = scmp.lt.u32.totalorder %s32_s0, %s87_s11  ;;  %p34_p7 = scmp.lt.u32.totalorder %s87_s11, %s128_s2 }
   0xe   :  { %p35_p8 = por %p34_p7, %p33_p6 }
  0x10   :  { %p36_p9 = pnand %p35_p8, %p31_p5 }
  0x12   :  { %39 = shalt.err (!%p36_p9)  }
  0x13   :  { %8 = dma.vmem_to_hbm [thread:$0]  %s6_s14, 256, %s128_s2, [#allocation0] }
  0x14   :  { %65 = dma.done.wait [#allocation0], 256  }
  0x15   :  { %66 = vsyncadd [#allocation0], 4294967040 }
  0x16   :  { %10 = vsyncpa [#allocation0], 1 }
  0x17   :  { %11 = vsyncpa [#allocation1], 0  ;;  %s12_s28 = sshll.u32 %s127_s1, 4  ;;  %s13_s28 = int_to_ptr.vmem [resolvable:$true] %s12_s28 }
  0x18   :  { %s40_s29 = scalar_lea.vmem %s13_s28, 256  ;;  %p45_p11 = scmp.lt.s32.totalorder %s13_s28, %s13_s28 }
  0x19   :  { %p41_p10 = scmp.ne.s32.totalorder %s13_s28, %s40_s29  ;;  %p46_p12 = scmp.lt.s32.totalorder %s40_s29, %s40_s29 }
  0x1b   :  { %p47_p13 = por %p46_p12, %p45_p11 }
  0x1d   :  { %p48_p0 = pnand %p47_p13, %p41_p10 }
  0x1f   :  { %51 = shalt.err (!%p48_p0)  }
  0x20   :  { %p53_p1 = scmp.ne.s32.totalorder %s87_s11, %s32_s0  ;;  %p56_p2 = scmp.lt.u32.totalorder %s32_s0, %s32_s0 }
  0x22   :  { %p57_p3 = por %p56_p2, %p34_p7 }
  0x24   :  { %p59_p4 = por %p57_p3, %p33_p6 }
  0x26   :  { %p60_p5 = pnand %p59_p4, %p53_p1 }
  0x28   :  { %63 = shalt.err (!%p60_p5)  }
  0x29   :  { %15 = dma.vmem_to_hbm [thread:$0]  %s13_s28, 256, %s87_s11, [#allocation1] }
  0x2a   :  { %67 = dma.done.wait [#allocation1], 256  }
  0x2b   :  { %68 = vsyncadd [#allocation1], 4294967040 }
  0x2c   :  { %17 = vsyncpa [#allocation1], 1 }

// kernel: roots_to_polynomial.1
= control target key start
LH: loop header
LB: loop body
LE: loop exit
PB: predicated region body
PF: predicated region fallthrough
CT: control target
= control target key end

     0   :  { %v8_v0 = vlaneseq  ;;  %v322_v4 = vmov 0.0   ;;  %s457_s0 = inlined_call_operand.vmem [shape: f32[2,8,128], index: 0, kind: input, shape index: {}]   ;;  %s458_s1 = inlined_call_operand.vmem [shape: f32[2,16,128], index: 1, kind: output, shape index: {}]  }
   0x1   :  { %v296_v2 = vld [vmem:[%s457_s0] ss:$0 sm:$0xff]  ;;  %v297_v3 = vld [vmem:[%s457_s0 + $0x8] ss:$0 sm:$0xff]  ;;  %v21_v5 = vrot.slane %v322_v4, 7 }
   0x2   :  { %v333_v1 = vshrl.u32 %v8_v0, 7  ;;  %v35_v8 = vmul.f32 0.0, %v297_v3  ;;  %v40_v9 = vmul.f32 0.0, %v296_v2  ;;  %v299_v24 = vld [vmem:[%s457_s0 + $0x1] ss:$0 sm:$0xff] }
   0x3   :  { %v300_v25 = vld [vmem:[%s457_s0 + $0x9] ss:$0 sm:$0xff]  ;;  %v302_v50 = vld [vmem:[%s457_s0 + $0x2] ss:$0 sm:$0xff]  ;;  %v303_v53 = vld [vmem:[%s457_s0 + $0xa] ss:$0 sm:$0xff] }
   0x4   :  { %vm11_vm0 = vcmp.eq.s32.totalorder %v333_v1, 0  ;;  %vm22_vm1 = vcmp.lt.s32.totalorder %v333_v1, 1 }
   0x5   :  { %v294_v6 = vsel %vm11_vm0, 1.0, %v322_v4 }
   0x6   :  { %v20_v7 = vrot.slane %v294_v6, 7 }
   0x8   :  { %v23_v10 = vsel %vm22_vm1, %v20_v7, %v21_v5  ;;  %v24_v11 = vsel %vm22_vm1, %v21_v5, %v20_v7 }
   0x9   :  { %v29_v12 = vmul.f32 %v296_v2, %v24_v11  ;;  %v30_v13 = vmul.f32 %v296_v2, %v23_v10  ;;  %v41_v14 = vmul.f32 %v297_v3, %v24_v11  ;;  %v42_v15 = vmul.f32 %v297_v3, %v23_v10 }
   0xb   :  { %v36_v16 = vsub.f32 %v29_v12, %v35_v8  ;;  %v37_v17 = vsub.f32 %v30_v13, %v35_v8  ;;  %v43_v18 = vadd.f32 %v41_v14, %v40_v9  ;;  %v44_v19 = vadd.f32 %v42_v15, %v40_v9  ;;  %v305_v13 = vld [vmem:[%s457_s0 + $0x3] ss:$0 sm:$0xff] }
   0xd   :  { %v38_v20 = vsub.f32 %v294_v6, %v36_v16  ;;  %v39_v21 = vsub.f32 0.0, %v37_v17  ;;  %v45_v22 = vsub.f32 0.0, %v43_v18  ;;  %v46_v23 = vsub.f32 0.0, %v44_v19  ;;  %v306_v16 = vld [vmem:[%s457_s0 + $0xb] ss:$0 sm:$0xff] }
   0xf   :  { %v49_v26 = vrot.slane %v38_v20, 7  ;;  %v50_v27 = vrot.slane %v39_v21, 7  ;;  %v53_v28 = vrot.slane %v45_v22, 7  ;;  %v54_v29 = vrot.slane %v46_v23, 7 }
  0x11   :  { %v51_v30 = vsel %vm22_vm1, %v49_v26, %v50_v27  ;;  %v52_v31 = vsel %vm22_vm1, %v50_v27, %v49_v26  ;;  %v55_v32 = vsel %vm22_vm1, %v53_v28, %v54_v29  ;;  %v56_v33 = vsel %vm22_vm1, %v54_v29, %v53_v28 }
  0x12   :  { %v61_v34 = vmul.f32 %v299_v24, %v52_v31  ;;  %v62_v35 = vmul.f32 %v299_v24, %v51_v30  ;;  %v67_v36 = vmul.f32 %v300_v25, %v56_v33  ;;  %v68_v37 = vmul.f32 %v300_v25, %v55_v32 }
  0x13   :  { %v73_v38 = vmul.f32 %v299_v24, %v56_v33  ;;  %v74_v39 = vmul.f32 %v299_v24, %v55_v32  ;;  %v75_v40 = vmul.f32 %v300_v25, %v52_v31  ;;  %v76_v41 = vmul.f32 %v300_v25, %v51_v30 }
  0x14   :  { %v69_v42 = vsub.f32 %v61_v34, %v67_v36  ;;  %v70_v43 = vsub.f32 %v62_v35, %v68_v37 }
  0x15   :  { %v77_v44 = vadd.f32 %v75_v40, %v73_v38  ;;  %v78_v45 = vadd.f32 %v76_v41, %v74_v39  ;;  %v308_v39 = vld [vmem:[%s457_s0 + $0x4] ss:$0 sm:$0xff] }
  0x16   :  { %v71_v46 = vsub.f32 %v38_v20, %v69_v42  ;;  %v72_v47 = vsub.f32 %v39_v21, %v70_v43  ;;  %v309_v42 = vld [vmem:[%s457_s0 + $0xc] ss:$0 sm:$0xff] }
  0x17   :  { %v79_v48 = vsub.f32 %v45_v22, %v77_v44  ;;  %v80_v49 = vsub.f32 %v46_v23, %v78_v45 }
  0x18   :  { %v83_v51 = vrot.slane %v71_v46, 7  ;;  %v84_v52 = vrot.slane %v72_v47, 7 }
  0x19   :  { %v87_v54 = vrot.slane %v79_v48, 7  ;;  %v88_v55 = vrot.slane %v80_v49, 7 }
  0x1a   :  { %v85_v56 = vsel %vm22_vm1, %v83_v51, %v84_v52  ;;  %v86_v57 = vsel %vm22_vm1, %v84_v52, %v83_v51 }
  0x1b   :  { %v89_v58 = vsel %vm22_vm1, %v87_v54, %v88_v55  ;;  %v90_v59 = vsel %vm22_vm1, %v88_v55, %v87_v54  ;;  %v95_v60 = vmul.f32 %v302_v50, %v86_v57  ;;  %v96_v61 = vmul.f32 %v302_v50, %v85_v56 }
  0x1c   :  { %v101_v62 = vmul.f32 %v303_v53, %v90_v59  ;;  %v102_v63 = vmul.f32 %v303_v53, %v89_v58  ;;  %v107_v0 = vmul.f32 %v302_v50, %v90_v59  ;;  %v108_v2 = vmul.f32 %v302_v50, %v89_v58 }
  0x1d   :  { %v109_v3 = vmul.f32 %v303_v53, %v86_v57  ;;  %v110_v4 = vmul.f32 %v303_v53, %v85_v56 }
  0x1e   :  { %v103_v5 = vsub.f32 %v95_v60, %v101_v62  ;;  %v104_v6 = vsub.f32 %v96_v61, %v102_v63 }
  0x1f   :  { %v111_v7 = vadd.f32 %v109_v3, %v107_v0  ;;  %v112_v8 = vadd.f32 %v110_v4, %v108_v2  ;;  %v311_v2 = vld [vmem:[%s457_s0 + $0x5] ss:$0 sm:$0xff] }
  0x20   :  { %v105_v9 = vsub.f32 %v71_v46, %v103_v5  ;;  %v106_v10 = vsub.f32 %v72_v47, %v104_v6  ;;  %v312_v5 = vld [vmem:[%s457_s0 + $0xd] ss:$0 sm:$0xff] }
  0x21   :  { %v113_v11 = vsub.f32 %v79_v48, %v111_v7  ;;  %v114_v12 = vsub.f32 %v80_v49, %v112_v8 }
  0x22   :  { %v117_v14 = vrot.slane %v105_v9, 7  ;;  %v118_v15 = vrot.slane %v106_v10, 7 }
  0x23   :  { %v121_v17 = vrot.slane %v113_v11, 7  ;;  %v122_v18 = vrot.slane %v114_v12, 7 }
  0x24   :  { %v119_v19 = vsel %vm22_vm1, %v117_v14, %v118_v15  ;;  %v120_v20 = vsel %vm22_vm1, %v118_v15, %v117_v14 }
  0x25   :  { %v123_v21 = vsel %vm22_vm1, %v121_v17, %v122_v18  ;;  %v124_v22 = vsel %vm22_vm1, %v122_v18, %v121_v17  ;;  %v129_v23 = vmul.f32 %v305_v13, %v120_v20  ;;  %v130_v24 = vmul.f32 %v305_v13, %v119_v19 }
  0x26   :  { %v135_v25 = vmul.f32 %v306_v16, %v124_v22  ;;  %v136_v26 = vmul.f32 %v306_v16, %v123_v21  ;;  %v141_v27 = vmul.f32 %v305_v13, %v124_v22  ;;  %v142_v28 = vmul.f32 %v305_v13, %v123_v21 }
  0x27   :  { %v143_v29 = vmul.f32 %v306_v16, %v120_v20  ;;  %v144_v30 = vmul.f32 %v306_v16, %v119_v19 }
  0x28   :  { %v137_v31 = vsub.f32 %v129_v23, %v135_v25  ;;  %v138_v32 = vsub.f32 %v130_v24, %v136_v26 }
  0x29   :  { %v145_v33 = vadd.f32 %v143_v29, %v141_v27  ;;  %v146_v34 = vadd.f32 %v144_v30, %v142_v28  ;;  %v314_v28 = vld [vmem:[%s457_s0 + $0x6] ss:$0 sm:$0xff] }
  0x2a   :  { %v139_v35 = vsub.f32 %v105_v9, %v137_v31  ;;  %v140_v36 = vsub.f32 %v106_v10, %v138_v32  ;;  %v315_v31 = vld [vmem:[%s457_s0 + $0xe] ss:$0 sm:$0xff] }
  0x2b   :  { %v147_v37 = vsub.f32 %v113_v11, %v145_v33  ;;  %v148_v38 = vsub.f32 %v114_v12, %v146_v34 }
  0x2c   :  { %v151_v40 = vrot.slane %v139_v35, 7  ;;  %v152_v41 = vrot.slane %v140_v36, 7 }
  0x2d   :  { %v155_v43 = vrot.slane %v147_v37, 7  ;;  %v156_v44 = vrot.slane %v148_v38, 7 }
  0x2e   :  { %v153_v45 = vsel %vm22_vm1, %v151_v40, %v152_v41  ;;  %v154_v46 = vsel %vm22_vm1, %v152_v41, %v151_v40 }
  0x2f   :  { %v157_v47 = vsel %vm22_vm1, %v155_v43, %v156_v44  ;;  %v158_v48 = vsel %vm22_vm1, %v156_v44, %v155_v43  ;;  %v163_v49 = vmul.f32 %v308_v39, %v154_v46  ;;  %v164_v50 = vmul.f32 %v308_v39, %v153_v45 }
  0x30   :  { %v169_v51 = vmul.f32 %v309_v42, %v158_v48  ;;  %v170_v52 = vmul.f32 %v309_v42, %v157_v47  ;;  %v175_v53 = vmul.f32 %v308_v39, %v158_v48  ;;  %v176_v54 = vmul.f32 %v308_v39, %v157_v47 }
  0x31   :  { %v177_v55 = vmul.f32 %v309_v42, %v154_v46  ;;  %v178_v56 = vmul.f32 %v309_v42, %v153_v45 }
  0x32   :  { %v171_v57 = vsub.f32 %v163_v49, %v169_v51  ;;  %v172_v58 = vsub.f32 %v164_v50, %v170_v52 }
  0x33   :  { %v179_v59 = vadd.f32 %v177_v55, %v175_v53  ;;  %v180_v60 = vadd.f32 %v178_v56, %v176_v54  ;;  %v317_v54 = vld [vmem:[%s457_s0 + $0x7] ss:$0 sm:$0xff] }
  0x34   :  { %v173_v61 = vsub.f32 %v139_v35, %v171_v57  ;;  %v174_v62 = vsub.f32 %v140_v36, %v172_v58  ;;  %v318_v57 = vld [vmem:[%s457_s0 + $0xf] ss:$0 sm:$0xff] }
  0x35   :  { %v181_v63 = vsub.f32 %v147_v37, %v179_v59  ;;  %v182_v0 = vsub.f32 %v148_v38, %v180_v60 }
  0x36   :  { %v185_v3 = vrot.slane %v173_v61, 7  ;;  %v186_v4 = vrot.slane %v174_v62, 7 }
  0x37   :  { %v189_v6 = vrot.slane %v181_v63, 7  ;;  %v190_v7 = vrot.slane %v182_v0, 7 }
  0x38   :  { %v187_v8 = vsel %vm22_vm1, %v185_v3, %v186_v4  ;;  %v188_v9 = vsel %vm22_vm1, %v186_v4, %v185_v3 }
  0x39   :  { %v191_v10 = vsel %vm22_vm1, %v189_v6, %v190_v7  ;;  %v192_v11 = vsel %vm22_vm1, %v190_v7, %v189_v6  ;;  %v197_v12 = vmul.f32 %v311_v2, %v188_v9  ;;  %v198_v13 = vmul.f32 %v311_v2, %v187_v8 }
  0x3a   :  { %v203_v14 = vmul.f32 %v312_v5, %v192_v11  ;;  %v204_v15 = vmul.f32 %v312_v5, %v191_v10  ;;  %v209_v16 = vmul.f32 %v311_v2, %v192_v11  ;;  %v210_v17 = vmul.f32 %v311_v2, %v191_v10 }
  0x3b   :  { %v211_v18 = vmul.f32 %v312_v5, %v188_v9  ;;  %v212_v19 = vmul.f32 %v312_v5, %v187_v8 }
  0x3c   :  { %v205_v20 = vsub.f32 %v197_v12, %v203_v14  ;;  %v206_v21 = vsub.f32 %v198_v13, %v204_v15 }
  0x3d   :  { %v213_v22 = vadd.f32 %v211_v18, %v209_v16  ;;  %v214_v23 = vadd.f32 %v212_v19, %v210_v17 }
  0x3e   :  { %v207_v24 = vsub.f32 %v173_v61, %v205_v20  ;;  %v208_v25 = vsub.f32 %v174_v62, %v206_v21 }
  0x3f   :  { %v215_v26 = vsub.f32 %v181_v63, %v213_v22  ;;  %v216_v27 = vsub.f32 %v182_v0, %v214_v23 }
  0x40   :  { %v219_v29 = vrot.slane %v207_v24, 7  ;;  %v220_v30 = vrot.slane %v208_v25, 7 }
  0x41   :  { %v223_v32 = vrot.slane %v215_v26, 7  ;;  %v224_v33 = vrot.slane %v216_v27, 7 }
  0x42   :  { %v221_v34 = vsel %vm22_vm1, %v219_v29, %v220_v30  ;;  %v222_v35 = vsel %vm22_vm1, %v220_v30, %v219_v29 }
  0x43   :  { %v225_v36 = vsel %vm22_vm1, %v223_v32, %v224_v33  ;;  %v226_v37 = vsel %vm22_vm1, %v224_v33, %v223_v32  ;;  %v231_v38 = vmul.f32 %v314_v28, %v222_v35  ;;  %v232_v39 = vmul.f32 %v314_v28, %v221_v34 }
  0x44   :  { %v237_v40 = vmul.f32 %v315_v31, %v226_v37  ;;  %v238_v41 = vmul.f32 %v315_v31, %v225_v36  ;;  %v243_v42 = vmul.f32 %v314_v28, %v226_v37  ;;  %v244_v43 = vmul.f32 %v314_v28, %v225_v36 }
  0x45   :  { %v245_v44 = vmul.f32 %v315_v31, %v222_v35  ;;  %v246_v45 = vmul.f32 %v315_v31, %v221_v34 }
  0x46   :  { %v239_v46 = vsub.f32 %v231_v38, %v237_v40  ;;  %v240_v47 = vsub.f32 %v232_v39, %v238_v41 }
  0x47   :  { %v247_v48 = vadd.f32 %v245_v44, %v243_v42  ;;  %v248_v49 = vadd.f32 %v246_v45, %v244_v43 }
  0x48   :  { %v241_v50 = vsub.f32 %v207_v24, %v239_v46  ;;  %v242_v51 = vsub.f32 %v208_v25, %v240_v47 }
  0x49   :  { %v249_v52 = vsub.f32 %v215_v26, %v247_v48  ;;  %v250_v53 = vsub.f32 %v216_v27, %v248_v49 }
  0x4a   :  { %v253_v55 = vrot.slane %v241_v50, 7  ;;  %v254_v56 = vrot.slane %v242_v51, 7 }
  0x4b   :  { %v257_v58 = vrot.slane %v249_v52, 7  ;;  %v258_v59 = vrot.slane %v250_v53, 7 }
  0x4c   :  { %v256_v60 = vsel %vm22_vm1, %v254_v56, %v253_v55  ;;  %v255_v61 = vsel %vm22_vm1, %v253_v55, %v254_v56 }
  0x4d   :  { %v260_v62 = vsel %vm22_vm1, %v258_v59, %v257_v58  ;;  %v265_v63 = vmul.f32 %v317_v54, %v256_v60  ;;  %v259_v0 = vsel %vm22_vm1, %v257_v58, %v258_v59  ;;  %v266_v2 = vmul.f32 %v317_v54, %v255_v61 }
  0x4e   :  { %v271_v3 = vmul.f32 %v318_v57, %v260_v62  ;;  %v272_v4 = vmul.f32 %v318_v57, %v259_v0  ;;  %v277_v5 = vmul.f32 %v317_v54, %v260_v62  ;;  %v279_v6 = vmul.f32 %v318_v57, %v256_v60 }
  0x4f   :  { %v278_v7 = vmul.f32 %v317_v54, %v259_v0  ;;  %v280_v8 = vmul.f32 %v318_v57, %v255_v61 }
  0x50   :  { %v273_v9 = vsub.f32 %v265_v63, %v271_v3  ;;  %v274_v10 = vsub.f32 %v266_v2, %v272_v4  ;;  %v281_v11 = vadd.f32 %v279_v6, %v277_v5 }
  0x51   :  { %v282_v12 = vadd.f32 %v280_v8, %v278_v7 }
  0x52   :  { %v275_v13 = vsub.f32 %v241_v50, %v273_v9  ;;  %v276_v14 = vsub.f32 %v242_v51, %v274_v10  ;;  %v283_v15 = vsub.f32 %v249_v52, %v281_v11 }
  0x53   :  { %v284_v16 = vsub.f32 %v250_v53, %v282_v12 }
  0x54   :  { %285 = vst [vmem:[%s458_s1] sm:$0xff] %v275_v13  ;;  %286 = vst [vmem:[%s458_s1 + $0x8] sm:$0xff] %v276_v14 }
  0x55   :  { %319 = vst [vmem:[%s458_s1 + $0x10] sm:$0xff] %v283_v15  ;;  %320 = vst [vmem:[%s458_s1 + $0x18] sm:$0xff] %v284_v16 }

</bundles_post_ra>
